<compile_context>
chip_gen: v7x
topology: tpu7x:2x2x1
jax: 0.10.0
libtpu: 0.0.40
codegen_flags: <defaults>
</compile_context>

<pallas_src>
import jax
import jax.numpy as jnp
from jax.experimental import pallas as pl
from jax.experimental.pallas import tpu as pltpu

EPS = 1e-5


# ----------------------------------------------------------------------------
# Parameter preprocessing (input independent).
# ----------------------------------------------------------------------------
def _banded_weights(wc, in_scale, W):
    """Banded conv-as-matmul weights.

    wc: (Cout, Cin, 3, 3) OIHW conv weight; in_scale: (Cin,) folded BN scale.
    Returns (3, Cin*W, Cout*W) where slab[ky][ci*W + w', co*W + w] equals
    in_scale[ci] * wc[co, ci, ky, w'-w+1] when |w'-w| <= 1 and 0 otherwise.
    The zero entries outside the band also implement the SAME padding in W.
    """
    Cout, Cin, KH, KW = wc.shape
    wi = jnp.arange(W)
    kx = wi[:, None] - wi[None, :] + (KW // 2)            # (W_in, W_out)
    valid = ((kx >= 0) & (kx < KW)).astype(wc.dtype)
    kxc = jnp.clip(kx, 0, KW - 1)
    # wt[ky, kx, ci, co], with BN scale folded per input channel.
    wt = jnp.transpose(wc, (2, 3, 1, 0)) * in_scale[None, None, :, None]
    big = wt[:, kxc, :, :] * valid[None, :, :, None, None]  # (KH,Wi,Wo,Ci,Co)
    big = jnp.transpose(big, (0, 3, 1, 4, 2))                # (KH,Ci,Wi,Co,Wo)
    return big.reshape(KH, Cin * W, Cout * W)


def _bias_map(bias, wc, H, W):
    """conv(zero-padded constant-`bias` image) -> (H, Cout*W).

    Position-dependent, border-aware contribution of the BN bias pushed
    through the following conv; added after the matmul.
    """
    Cout, Cin, KH, KW = wc.shape
    tap = jnp.einsum('i,oikl->okl', bias, wc)              # (Cout, KH, KW)
    hh = jnp.arange(H)[:, None] + jnp.arange(KH)[None, :] - KH // 2
    hv = ((hh >= 0) & (hh < H)).astype(wc.dtype)           # (H, KH)
    ww = jnp.arange(W)[:, None] + jnp.arange(KW)[None, :] - KW // 2
    wv = ((ww >= 0) & (ww < W)).astype(wc.dtype)           # (W, KW)
    bm = jnp.einsum('okl,hk,wl->ohw', tap, hv, wv)         # (Cout, H, W)
    return jnp.transpose(bm, (1, 0, 2)).reshape(H, Cout * W)


# ----------------------------------------------------------------------------
# Tiling helpers.
# ----------------------------------------------------------------------------
def _round_up(n, m):
    return ((n + m - 1) // m) * m


def _pick_bt(B, H, tile):
    """Images per grid step.

    M = Bt*H targets the 256-deep v6e/v7x MXU (and stays within the
    ~(256, 128) f32 accumulator vreg budget); Bt must be a multiple of the
    sublane tile so the in-kernel (H, Bt, L) -> (H*Bt, L) slab merge is a
    free view.  The wrapper zero-pads the batch up to a multiple of Bt.
    """
    max_bt = max(tile, (256 // max(H, 1)) // tile * tile)
    return min(max_bt, _round_up(B, tile))


# ----------------------------------------------------------------------------
# Kernel.
# ----------------------------------------------------------------------------
def _make_kernel(Bt, H, Lin, Lmid):
    def kernel(x_ref, w1_ref, bm1_ref, w2_ref, bm2_ref, o_ref, pad1, pad2):
        # Zero only the two halo rows of each padded scratch buffer (done
        # every step so it stays correct if the "parallel" batch axis is
        # sharded across TensorCores).
        pad1[0:1] = jnp.zeros((1, Bt, Lin), pad1.dtype)
        pad1[H + 1:H + 2] = jnp.zeros((1, Bt, Lin), pad1.dtype)
        pad2[0:1] = jnp.zeros((1, Bt, Lmid), pad2.dtype)
        pad2[H + 1:H + 2] = jnp.zeros((1, Bt, Lmid), pad2.dtype)

        # ---- stage 1: conv1(BN1(x)) + ReLU ---------------------------------
        # BN1 scale is folded into w1_ref; BN1 bias arrives via bm1_ref.
        # x is already in the matmul dtype -> single contiguous copy, no cast.
        pad1[1:H + 1] = x_ref[...]

        acc = jnp.zeros((H * Bt, Lmid), jnp.float32)
        for ky in range(3):                      # static, unrolled
            # Contiguous major-dim slice; reshape merges leading dims
            # (free view because Bt is a sublane-tile multiple).
            slab = pad1[ky:ky + H].reshape(H * Bt, Lin)
            acc = acc + jnp.dot(slab, w1_ref[ky],
                                preferred_element_type=jnp.float32)
        y1 = jnp.maximum(
            acc.reshape(H, Bt, Lmid) + bm1_ref[...][:, None, :], 0.0)

        # ---- stage 2: conv2(BN2(y1)) + ReLU --------------------------------
        pad2[1:H + 1] = y1.astype(pad2.dtype)

        acc2 = jnp.zeros((H * Bt, Lmid), jnp.float32)
        for ky in range(3):
            slab = pad2[ky:ky + H].reshape(H * Bt, Lmid)
            acc2 = acc2 + jnp.dot(slab, w2_ref[ky],
                                  preferred_element_type=jnp.float32)
        out = jnp.maximum(
            acc2.reshape(H, Bt, Lmid) + bm2_ref[...][:, None, :], 0.0)
        o_ref[...] = out.astype(o_ref.dtype)     # lane-dense (H, Bt, W*Cout)

    return kernel


# ----------------------------------------------------------------------------
# Wrapper.
# ----------------------------------------------------------------------------
def conv_block_forward(x_nchw, params, matmul_dtype=jnp.bfloat16):
    """ConvBlock forward. x_nchw: (B, Cin, H, W) f32 -> (B, Cout, H, W) f32.

    matmul_dtype=jnp.bfloat16 (default) uses bf16 MXU operands with f32
    accumulate on every TPU generation; pass jnp.float32 for the exact path.
    """
    (g1, be1, rm1, rv1, w1, g2, be2, rm2, rv2, w2) = params
    B, Cin, H, W = x_nchw.shape
    Cout = w1.shape[0]
    Lin, Lmid = Cin * W, Cout * W

    # Fold BatchNorm (inference mode) into per-channel scale/bias.
    s1 = g1 * jax.lax.rsqrt(rv1 + EPS)
    b1 = be1 - rm1 * s1
    s2 = g2 * jax.lax.rsqrt(rv2 + EPS)
    b2 = be2 - rm2 * s2

    # Banded weights (BN scale folded) + additive bias maps.
    w1b = _banded_weights(w1, s1, W).astype(matmul_dtype)
    w2b = _banded_weights(w2, s2, W).astype(matmul_dtype)
    bm1 = _bias_map(b1, w1, H, W).astype(jnp.float32)
    bm2 = _bias_map(b2, w2, H, W).astype(jnp.float32)

    # NCHW -> (H, B, C*W): lane = c*W + w (dense stores), H major so the
    # in-kernel ky-shifted slabs are contiguous views.  Cast once here so the
    # input HBM DMA is already in the matmul dtype.
    x_r = jnp.transpose(x_nchw, (2, 0, 1, 3)).reshape(H, B, Lin)
    x_r = x_r.astype(matmul_dtype)

    sub_tile = 8 * (4 // jnp.dtype(matmul_dtype).itemsize)  # 8 f32 / 16 bf16
    Bt = _pick_bt(B, H, sub_tile)
    B_pad = _round_up(B, Bt)
    if B_pad != B:
        x_r = jnp.pad(x_r, ((0, 0), (0, B_pad - B), (0, 0)))
    grid = (B_pad // Bt,)

    kernel = _make_kernel(Bt, H, Lin, Lmid)
    out = pl.pallas_call(
        kernel,
        out_shape=jax.ShapeDtypeStruct((H, B_pad, Lmid), jnp.float32),
        grid_spec=pltpu.PrefetchScalarGridSpec(
            num_scalar_prefetch=0,
            grid=grid,
            in_specs=[
                pl.BlockSpec((H, Bt, Lin), lambda b: (0, b, 0)),     # x
                pl.BlockSpec((3, Lin, Lmid), lambda b: (0, 0, 0)),   # w1 band
                pl.BlockSpec((H, Lmid), lambda b: (0, 0)),           # bias map1
                pl.BlockSpec((3, Lmid, Lmid), lambda b: (0, 0, 0)),  # w2 band
                pl.BlockSpec((H, Lmid), lambda b: (0, 0)),           # bias map2
            ],
            out_specs=pl.BlockSpec((H, Bt, Lmid), lambda b: (0, b, 0)),
            scratch_shapes=[
                pltpu.VMEM((H + 2, Bt, Lin), matmul_dtype),   # h-pad stage 1
                pltpu.VMEM((H + 2, Bt, Lmid), matmul_dtype),  # h-pad stage 2
            ],
        ),
        compiler_params=pltpu.CompilerParams(
            dimension_semantics=("parallel",)),
    )(x_r, w1b, bm1, w2b, bm2)

    out = out[:, :B]
    # (H, B, Cout*W) -> NCHW.
    return jnp.transpose(out.reshape(H, B, Cout, W), (1, 2, 0, 3))


# ----------------------------------------------------------------------------
# Pure-JAX reference (inference-mode BN) + params.
# ----------------------------------------------------------------------------
def reference_forward(x_nchw, params):
    (g1, be1, rm1, rv1, w1, g2, be2, rm2, rv2, w2) = params

    def bn(x, g, b, rm, rv):
        return ((x - rm[None, :, None, None])
                / jnp.sqrt(rv + EPS)[None, :, None, None]
                * g[None, :, None, None] + b[None, :, None, None])

    dn = ('NCHW', 'OIHW', 'NCHW')
    y = bn(x_nchw, g1, be1, rm1, rv1)
    y = jax.lax.conv_general_dilated(y, w1, (1, 1), 'SAME',
                                     dimension_numbers=dn)
    y = jnp.maximum(y, 0.0)
    y = bn(y, g2, be2, rm2, rv2)
    y = jax.lax.conv_general_dilated(y, w2, (1, 1), 'SAME',
                                     dimension_numbers=dn)
    return jnp.maximum(y, 0.0)


def init_params(key, in_depth, out_depth):
    ks = jax.random.split(key, 10)
    g1 = jax.random.uniform(ks[0], (in_depth,), jnp.float32, 0.5, 1.5)
    be1 = 0.1 * jax.random.normal(ks[1], (in_depth,), jnp.float32)
    rm1 = 0.1 * jax.random.normal(ks[2], (in_depth,), jnp.float32)
    rv1 = jax.random.uniform(ks[3], (in_depth,), jnp.float32, 0.5, 1.5)
    w1 = 0.1 * jax.random.normal(ks[4], (out_depth, in_depth, 3, 3),
                                 jnp.float32)
    g2 = jax.random.uniform(ks[5], (out_depth,), jnp.float32, 0.5, 1.5)
    be2 = 0.1 * jax.random.normal(ks[6], (out_depth,), jnp.float32)
    rm2 = 0.1 * jax.random.normal(ks[7], (out_depth,), jnp.float32)
    rv2 = jax.random.uniform(ks[8], (out_depth,), jnp.float32, 0.5, 1.5)
    w2 = 0.1 * jax.random.normal(ks[9], (out_depth, out_depth, 3, 3),
                                 jnp.float32)
    return (g1, be1, rm1, rv1, w1, g2, be2, rm2, rv2, w2)


if __name__ == "__main__":
    B, Cin, Cout, H, W = 2, 4, 8, 16, 16
    key = jax.random.PRNGKey(0)
    k_x, k_p = jax.random.split(key)
    x = jax.random.normal(k_x, (B, Cin, H, W), jnp.float32)
    params = init_params(k_p, Cin, Cout)

    ref = jax.block_until_ready(reference_forward(x, params))

    # Default path: bf16 MXU operands, f32 accumulate (all generations).
    fwd_bf16 = jax.jit(conv_block_forward)
    out_bf = jax.block_until_ready(fwd_bf16(x, params))
    assert out_bf.shape == (B, Cout, H, W)
    assert jnp.allclose(out_bf, ref, atol=5e-2, rtol=5e-2), \
        f"bf16 max abs err {jnp.max(jnp.abs(out_bf - ref))}"

    # Exact f32 path.
    fwd_f32 = jax.jit(lambda xx, pp: conv_block_forward(xx, pp, jnp.float32))
    out = jax.block_until_ready(fwd_f32(x, params))
    assert jnp.allclose(out, ref, atol=1e-4, rtol=1e-4), \
        f"f32 max abs err {jnp.max(jnp.abs(out - ref))}"

    print("KERNEL_OK")
</pallas_src>

<mosaic_0001>
module attributes {stable_mosaic.version = 11 : i64} {
  func.func @kernel(%arg0: i32, %arg1: memref<16x16x64xbf16, #tpu.memory_space<vmem>>, %arg2: memref<3x64x128xbf16, #tpu.memory_space<vmem>>, %arg3: memref<16x128xf32, #tpu.memory_space<vmem>>, %arg4: memref<3x128x128xbf16, #tpu.memory_space<vmem>>, %arg5: memref<16x128xf32, #tpu.memory_space<vmem>>, %arg6: memref<16x16x128xf32, #tpu.memory_space<vmem>>, %arg7: memref<18x16x64xbf16, #tpu.memory_space<vmem>>, %arg8: memref<18x16x128xbf16, #tpu.memory_space<vmem>>) attributes {dimension_semantics = [#tpu.dimension_semantics<parallel>], iteration_bounds = array<i64: 1>, scalar_prefetch = 0 : i64, scratch_operands = 2 : i64, tpu.core_type = #tpu.core_type<tc>, window_params = [{transform_indices = @transform_0, window_bounds = array<i64: 16, 16, 64>}, {pipeline_mode = #tpu.pipeline_mode<synchronous>, transform_indices = @transform_1, window_bounds = array<i64: 3, 64, 128>}, {pipeline_mode = #tpu.pipeline_mode<synchronous>, transform_indices = @transform_2, window_bounds = array<i64: 16, 128>}, {pipeline_mode = #tpu.pipeline_mode<synchronous>, transform_indices = @transform_3, window_bounds = array<i64: 3, 128, 128>}, {pipeline_mode = #tpu.pipeline_mode<synchronous>, transform_indices = @transform_4, window_bounds = array<i64: 16, 128>}, {transform_indices = @transform_5, window_bounds = array<i64: 16, 16, 128>}]} {
    %cst = arith.constant 0.000000e+00 : bf16
    %0 = vector.broadcast %cst : bf16 to vector<1x16x64xbf16>
    %c0 = arith.constant 0 : index
    %c0_0 = arith.constant 0 : index
    %c0_1 = arith.constant 0 : index
    %1 = vector.load %arg7[%c0, %c0_0, %c0_1] : memref<18x16x64xbf16, #tpu.memory_space<vmem>>, vector<1x16x64xbf16>
    tpu.vector_store %arg7[%c0, %c0_0, %c0_1], %0 {strides = array<i32>} : memref<18x16x64xbf16, #tpu.memory_space<vmem>>, vector<1x16x64xbf16>,
    %cst_2 = arith.constant 0.000000e+00 : bf16
    %2 = vector.broadcast %cst_2 : bf16 to vector<1x16x64xbf16>
    %c17 = arith.constant 17 : index
    %c0_3 = arith.constant 0 : index
    %c0_4 = arith.constant 0 : index
    %3 = vector.load %arg7[%c17, %c0_3, %c0_4] : memref<18x16x64xbf16, #tpu.memory_space<vmem>>, vector<1x16x64xbf16>
    tpu.vector_store %arg7[%c17, %c0_3, %c0_4], %2 {strides = array<i32>} : memref<18x16x64xbf16, #tpu.memory_space<vmem>>, vector<1x16x64xbf16>,
    %cst_5 = arith.constant 0.000000e+00 : bf16
    %4 = vector.broadcast %cst_5 : bf16 to vector<1x16x128xbf16>
    %c0_6 = arith.constant 0 : index
    %c0_7 = arith.constant 0 : index
    %c0_8 = arith.constant 0 : index
    %5 = vector.load %arg8[%c0_6, %c0_7, %c0_8] : memref<18x16x128xbf16, #tpu.memory_space<vmem>>, vector<1x16x128xbf16>
    tpu.vector_store %arg8[%c0_6, %c0_7, %c0_8], %4 {strides = array<i32>} : memref<18x16x128xbf16, #tpu.memory_space<vmem>>, vector<1x16x128xbf16>,
    %cst_9 = arith.constant 0.000000e+00 : bf16
    %6 = vector.broadcast %cst_9 : bf16 to vector<1x16x128xbf16>
    %c17_10 = arith.constant 17 : index
    %c0_11 = arith.constant 0 : index
    %c0_12 = arith.constant 0 : index
    %7 = vector.load %arg8[%c17_10, %c0_11, %c0_12] : memref<18x16x128xbf16, #tpu.memory_space<vmem>>, vector<1x16x128xbf16>
    tpu.vector_store %arg8[%c17_10, %c0_11, %c0_12], %6 {strides = array<i32>} : memref<18x16x128xbf16, #tpu.memory_space<vmem>>, vector<1x16x128xbf16>,
    %c0_13 = arith.constant 0 : index
    %c0_14 = arith.constant 0 : index
    %c0_15 = arith.constant 0 : index
    %8 = vector.load %arg1[%c0_13, %c0_14, %c0_15] : memref<16x16x64xbf16, #tpu.memory_space<vmem>>, vector<16x16x64xbf16>
    %c1 = arith.constant 1 : index
    %c0_16 = arith.constant 0 : index
    %c0_17 = arith.constant 0 : index
    %9 = vector.load %arg7[%c1, %c0_16, %c0_17] : memref<18x16x64xbf16, #tpu.memory_space<vmem>>, vector<16x16x64xbf16>
    tpu.vector_store %arg7[%c1, %c0_16, %c0_17], %8 {strides = array<i32>} : memref<18x16x64xbf16, #tpu.memory_space<vmem>>, vector<16x16x64xbf16>,
    %cst_18 = arith.constant 0.000000e+00 : f32
    %10 = vector.broadcast %cst_18 : f32 to vector<256x128xf32>
    %c0_19 = arith.constant 0 : index
    %c0_20 = arith.constant 0 : index
    %c0_21 = arith.constant 0 : index
    %11 = vector.load %arg7[%c0_19, %c0_20, %c0_21] : memref<18x16x64xbf16, #tpu.memory_space<vmem>>, vector<16x16x64xbf16>
    %12 = vector.shape_cast %11 : vector<16x16x64xbf16> to vector<256x64xbf16>
    %c0_22 = arith.constant 0 : index
    %c0_23 = arith.constant 0 : index
    %c0_24 = arith.constant 0 : index
    %13 = vector.load %arg2[%c0_22, %c0_23, %c0_24] : memref<3x64x128xbf16, #tpu.memory_space<vmem>>, vector<1x64x128xbf16>
    %14 = vector.shape_cast %13 : vector<1x64x128xbf16> to vector<64x128xbf16>
    %cst_25 = arith.constant dense<0.000000e+00> : vector<256x128xf32>
    %15 = tpu.matmul %12, %14, %cst_25 {dimension_numbers = #tpu.dot_dimension_numbers<[1], [0], [0], [1], [0, 0, 1, 1], [], []>} : vector<256x64xbf16>, vector<64x128xbf16>, vector<256x128xf32> -> vector<256x128xf32>
    %16 = arith.addf %10, %15 : vector<256x128xf32>
    %c1_26 = arith.constant 1 : index
    %c0_27 = arith.constant 0 : index
    %c0_28 = arith.constant 0 : index
    %17 = vector.load %arg7[%c1_26, %c0_27, %c0_28] : memref<18x16x64xbf16, #tpu.memory_space<vmem>>, vector<16x16x64xbf16>
    %18 = vector.shape_cast %17 : vector<16x16x64xbf16> to vector<256x64xbf16>
    %c1_29 = arith.constant 1 : index
    %c0_30 = arith.constant 0 : index
    %c0_31 = arith.constant 0 : index
    %19 = vector.load %arg2[%c1_29, %c0_30, %c0_31] : memref<3x64x128xbf16, #tpu.memory_space<vmem>>, vector<1x64x128xbf16>
    %20 = vector.shape_cast %19 : vector<1x64x128xbf16> to vector<64x128xbf16>
    %cst_32 = arith.constant dense<0.000000e+00> : vector<256x128xf32>
    %21 = tpu.matmul %18, %20, %cst_32 {dimension_numbers = #tpu.dot_dimension_numbers<[1], [0], [0], [1], [0, 0, 1, 1], [], []>} : vector<256x64xbf16>, vector<64x128xbf16>, vector<256x128xf32> -> vector<256x128xf32>
    %22 = arith.addf %16, %21 : vector<256x128xf32>
    %c2 = arith.constant 2 : index
    %c0_33 = arith.constant 0 : index
    %c0_34 = arith.constant 0 : index
    %23 = vector.load %arg7[%c2, %c0_33, %c0_34] : memref<18x16x64xbf16, #tpu.memory_space<vmem>>, vector<16x16x64xbf16>
    %24 = vector.shape_cast %23 : vector<16x16x64xbf16> to vector<256x64xbf16>
    %c2_35 = arith.constant 2 : index
    %c0_36 = arith.constant 0 : index
    %c0_37 = arith.constant 0 : index
    %25 = vector.load %arg2[%c2_35, %c0_36, %c0_37] : memref<3x64x128xbf16, #tpu.memory_space<vmem>>, vector<1x64x128xbf16>
    %26 = vector.shape_cast %25 : vector<1x64x128xbf16> to vector<64x128xbf16>
    %cst_38 = arith.constant dense<0.000000e+00> : vector<256x128xf32>
    %27 = tpu.matmul %24, %26, %cst_38 {dimension_numbers = #tpu.dot_dimension_numbers<[1], [0], [0], [1], [0, 0, 1, 1], [], []>} : vector<256x64xbf16>, vector<64x128xbf16>, vector<256x128xf32> -> vector<256x128xf32>
    %28 = arith.addf %22, %27 : vector<256x128xf32>
    %29 = vector.shape_cast %28 : vector<256x128xf32> to vector<16x16x128xf32>
    %c0_39 = arith.constant 0 : index
    %c0_40 = arith.constant 0 : index
    %30 = vector.load %arg3[%c0_39, %c0_40] : memref<16x128xf32, #tpu.memory_space<vmem>>, vector<16x128xf32>
    %31 = vector.shape_cast %30 : vector<16x128xf32> to vector<16x1x128xf32>
    %32 = vector.broadcast %31 : vector<16x1x128xf32> to vector<16x16x128xf32>
    %33 = arith.addf %29, %32 : vector<16x16x128xf32>
    %cst_41 = arith.constant 0.000000e+00 : f32
    %34 = vector.broadcast %cst_41 : f32 to vector<16x16x128xf32>
    %35 = arith.maximumf %33, %34 : vector<16x16x128xf32>
    %36 = arith.truncf %35 : vector<16x16x128xf32> to vector<16x16x128xbf16>
    %c1_42 = arith.constant 1 : index
    %c0_43 = arith.constant 0 : index
    %c0_44 = arith.constant 0 : index
    %37 = vector.load %arg8[%c1_42, %c0_43, %c0_44] : memref<18x16x128xbf16, #tpu.memory_space<vmem>>, vector<16x16x128xbf16>
    tpu.vector_store %arg8[%c1_42, %c0_43, %c0_44], %36 {strides = array<i32>} : memref<18x16x128xbf16, #tpu.memory_space<vmem>>, vector<16x16x128xbf16>,
    %cst_45 = arith.constant 0.000000e+00 : f32
    %38 = vector.broadcast %cst_45 : f32 to vector<256x128xf32>
    %c0_46 = arith.constant 0 : index
    %c0_47 = arith.constant 0 : index
    %c0_48 = arith.constant 0 : index
    %39 = vector.load %arg8[%c0_46, %c0_47, %c0_48] : memref<18x16x128xbf16, #tpu.memory_space<vmem>>, vector<16x16x128xbf16>
    %40 = vector.shape_cast %39 : vector<16x16x128xbf16> to vector<256x128xbf16>
    %c0_49 = arith.constant 0 : index
    %c0_50 = arith.constant 0 : index
    %c0_51 = arith.constant 0 : index
    %41 = vector.load %arg4[%c0_49, %c0_50, %c0_51] : memref<3x128x128xbf16, #tpu.memory_space<vmem>>, vector<1x128x128xbf16>
    %42 = vector.shape_cast %41 : vector<1x128x128xbf16> to vector<128x128xbf16>
    %cst_52 = arith.constant dense<0.000000e+00> : vector<256x128xf32>
    %43 = tpu.matmul %40, %42, %cst_52 {dimension_numbers = #tpu.dot_dimension_numbers<[1], [0], [0], [1], [0, 0, 1, 1], [], []>} : vector<256x128xbf16>, vector<128x128xbf16>, vector<256x128xf32> -> vector<256x128xf32>
    %44 = arith.addf %38, %43 : vector<256x128xf32>
    %c1_53 = arith.constant 1 : index
    %c0_54 = arith.constant 0 : index
    %c0_55 = arith.constant 0 : index
    %45 = vector.load %arg8[%c1_53, %c0_54, %c0_55] : memref<18x16x128xbf16, #tpu.memory_space<vmem>>, vector<16x16x128xbf16>
    %46 = vector.shape_cast %45 : vector<16x16x128xbf16> to vector<256x128xbf16>
    %c1_56 = arith.constant 1 : index
    %c0_57 = arith.constant 0 : index
    %c0_58 = arith.constant 0 : index
    %47 = vector.load %arg4[%c1_56, %c0_57, %c0_58] : memref<3x128x128xbf16, #tpu.memory_space<vmem>>, vector<1x128x128xbf16>
    %48 = vector.shape_cast %47 : vector<1x128x128xbf16> to vector<128x128xbf16>
    %cst_59 = arith.constant dense<0.000000e+00> : vector<256x128xf32>
    %49 = tpu.matmul %46, %48, %cst_59 {dimension_numbers = #tpu.dot_dimension_numbers<[1], [0], [0], [1], [0, 0, 1, 1], [], []>} : vector<256x128xbf16>, vector<128x128xbf16>, vector<256x128xf32> -> vector<256x128xf32>
    %50 = arith.addf %44, %49 : vector<256x128xf32>
    %c2_60 = arith.constant 2 : index
    %c0_61 = arith.constant 0 : index
    %c0_62 = arith.constant 0 : index
    %51 = vector.load %arg8[%c2_60, %c0_61, %c0_62] : memref<18x16x128xbf16, #tpu.memory_space<vmem>>, vector<16x16x128xbf16>
    %52 = vector.shape_cast %51 : vector<16x16x128xbf16> to vector<256x128xbf16>
    %c2_63 = arith.constant 2 : index
    %c0_64 = arith.constant 0 : index
    %c0_65 = arith.constant 0 : index
    %53 = vector.load %arg4[%c2_63, %c0_64, %c0_65] : memref<3x128x128xbf16, #tpu.memory_space<vmem>>, vector<1x128x128xbf16>
    %54 = vector.shape_cast %53 : vector<1x128x128xbf16> to vector<128x128xbf16>
    %cst_66 = arith.constant dense<0.000000e+00> : vector<256x128xf32>
    %55 = tpu.matmul %52, %54, %cst_66 {dimension_numbers = #tpu.dot_dimension_numbers<[1], [0], [0], [1], [0, 0, 1, 1], [], []>} : vector<256x128xbf16>, vector<128x128xbf16>, vector<256x128xf32> -> vector<256x128xf32>
    %56 = arith.addf %50, %55 : vector<256x128xf32>
    %57 = vector.shape_cast %56 : vector<256x128xf32> to vector<16x16x128xf32>
    %c0_67 = arith.constant 0 : index
    %c0_68 = arith.constant 0 : index
    %58 = vector.load %arg5[%c0_67, %c0_68] : memref<16x128xf32, #tpu.memory_space<vmem>>, vector<16x128xf32>
    %59 = vector.shape_cast %58 : vector<16x128xf32> to vector<16x1x128xf32>
    %60 = vector.broadcast %59 : vector<16x1x128xf32> to vector<16x16x128xf32>
    %61 = arith.addf %57, %60 : vector<16x16x128xf32>
    %cst_69 = arith.constant 0.000000e+00 : f32
    %62 = vector.broadcast %cst_69 : f32 to vector<16x16x128xf32>
    %63 = arith.maximumf %61, %62 : vector<16x16x128xf32>
    %c0_70 = arith.constant 0 : index
    %c0_71 = arith.constant 0 : index
    %c0_72 = arith.constant 0 : index
    %64 = vector.load %arg6[%c0_70, %c0_71, %c0_72] : memref<16x16x128xf32, #tpu.memory_space<vmem>>, vector<16x16x128xf32>
    tpu.vector_store %arg6[%c0_70, %c0_71, %c0_72], %63 {strides = array<i32>} : memref<16x16x128xf32, #tpu.memory_space<vmem>>, vector<16x16x128xf32>,
    return
  }
  func.func @transform_0(%arg0: i32) -> (i32, i32, i32) {
    %c0_i32 = arith.constant 0 : i32
    %c0_i32_0 = arith.constant 0 : i32
    %c0_i32_1 = arith.constant 0 : i32
    return %c0_i32, %arg0, %c0_i32_0 : i32, i32, i32
  }
  func.func @transform_1(%arg0: i32) -> (i32, i32, i32) {
    %c0_i32 = arith.constant 0 : i32
    %c0_i32_0 = arith.constant 0 : i32
    %c0_i32_1 = arith.constant 0 : i32
    %c0_i32_2 = arith.constant 0 : i32
    return %c0_i32, %c0_i32_0, %c0_i32_1 : i32, i32, i32
  }
  func.func @transform_2(%arg0: i32) -> (i32, i32) {
    %c0_i32 = arith.constant 0 : i32
    %c0_i32_0 = arith.constant 0 : i32
    %c0_i32_1 = arith.constant 0 : i32
    return %c0_i32, %c0_i32_0 : i32, i32
  }
  func.func @transform_3(%arg0: i32) -> (i32, i32, i32) {
    %c0_i32 = arith.constant 0 : i32
    %c0_i32_0 = arith.constant 0 : i32
    %c0_i32_1 = arith.constant 0 : i32
    %c0_i32_2 = arith.constant 0 : i32
    return %c0_i32, %c0_i32_0, %c0_i32_1 : i32, i32, i32
  }
  func.func @transform_4(%arg0: i32) -> (i32, i32) {
    %c0_i32 = arith.constant 0 : i32
    %c0_i32_0 = arith.constant 0 : i32
    %c0_i32_1 = arith.constant 0 : i32
    return %c0_i32, %c0_i32_0 : i32, i32
  }
  func.func @transform_5(%arg0: i32) -> (i32, i32, i32) {
    %c0_i32 = arith.constant 0 : i32
    %c0_i32_0 = arith.constant 0 : i32
    %c0_i32_1 = arith.constant 0 : i32
    return %c0_i32, %arg0, %c0_i32_0 : i32, i32, i32
  }
}

</mosaic_0001>

<bundles_post_ra>
// kernel: conv_block_forward.1
= control target key start
LH: loop header
LB: loop body
LE: loop exit
PB: predicated region body
PF: predicated region fallthrough
CT: control target
= control target key end

     0   :  { %vm21_vm0 = vcmask 523264   ;;  %v3044_v1 = vmov 0   ;;  %v3045_v56 = vmov 1966171168   ;;  %v987_v58 = vlaneseq  ;;  %s3626_s1 = inlined_call_operand.vmem [shape: bf16[3,64,128], index: 1, kind: input, shape index: {}]   ;;  %s3627_s0 = inlined_call_operand.vmem [shape: bf16[16,16,64], index: 0, kind: input, shape index: {}]   ;;  %s3628_s3 = inlined_call_operand.vmem [shape: bf16[3,128,128], index: 3, kind: input, shape index: {}]   ;;  %s3629_s2 = inlined_call_operand.vmem [shape: f32[16,128], index: 2, kind: input, shape index: {}]   ;;  %s3630_s4 = inlined_call_operand.vmem [shape: f32[16,128], index: 4, kind: input, shape index: {}]   ;;  %s3631_s5 = inlined_call_operand.vmem [shape: f32[16,16,128], index: 5, kind: output, shape index: {}]  }
   0x1   :  { %v2988_v0 = vld [vmem:[%s3626_s1 + $0x20] sm:$0xff]   ;;  %22 = vst.msk [vmem:[#allocation2] sm:$0xff] %vm21_vm0, %v3044_v1  ;;  %24 = vst.msk [vmem:[#allocation2 + $0x88] sm:$0xff] %vm21_vm0, %v3044_v1  ;;  %v2989_v2 = vld [vmem:[%s3626_s1 + $0x28] sm:$0xff]   ;;  %v985_v57 = vunpack.c.l.s4 %v3045_v56 }
   0x2   :  { %2578 = vmatprep.subr.bf16.mxu0 %v2988_v0  ;;  %v2990_v3 = vld [vmem:[%s3626_s1 + $0x30] sm:$0xff]   ;;  %v2992_v4 = vld [vmem:[%s3627_s0] sm:$0xff]   ;;  %v2993_v5 = vld [vmem:[%s3627_s0 + $0x8] sm:$0xff]   ;;  %v988_v60 = vshrl.u32 %v987_v58, 7 }
   0x3   :  { %2579 = vmatpush3.bf16.msra.mxu0 %v2988_v0  ;;  %v2991_v6 = vld [vmem:[%s3626_s1 + $0x38] sm:$0xff]   ;;  %157 = vst.msk [vmem:[#allocation2 + $0x8] sm:$0xff] %vm21_vm0, %v2992_v4  ;;  %158 = vst.msk [vmem:[#allocation2 + $0x10] sm:$0xff] %vm21_vm0, %v2993_v5  ;;  %v2995_v7 = vld [vmem:[%s3627_s0 + $0x10] sm:$0xff]   ;;  %v986_v59 = vunpack.c.0.s8 %v985_v57 }
   0x4   :  { %2580 = vmatprep.subr.bf16.mxu0 %v2989_v2  ;;  %v2996_v8 = vld [vmem:[%s3627_s0 + $0x18] sm:$0xff]   ;;  %159 = vst.msk [vmem:[#allocation2 + $0x18] sm:$0xff] %vm21_vm0, %v2995_v7  ;;  %v2997_v9 = vld [vmem:[%s3627_s0 + $0x20] sm:$0xff]   ;;  %v2998_v10 = vld [vmem:[%s3627_s0 + $0x28] sm:$0xff]  }
   0x5   :  { %160 = vst.msk [vmem:[#allocation2 + $0x20] sm:$0xff] %vm21_vm0, %v2996_v8  ;;  %v2994_v11 = vld [vmem:[%s3626_s1] sm:$0xff]   ;;  %161 = vst.msk [vmem:[#allocation2 + $0x28] sm:$0xff] %vm21_vm0, %v2997_v9  ;;  %v3000_v12 = vld [vmem:[%s3627_s0 + $0x30] sm:$0xff]   ;;  %v3336_v61 = vsub.s32 %v986_v59, %v988_v60 }
   0x6   :  { %162 = vst.msk [vmem:[#allocation2 + $0x30] sm:$0xff] %vm21_vm0, %v2998_v10  ;;  %v2999_v15 = vld [vmem:[%s3626_s1 + $0x8] sm:$0xff]   ;;  %163 = vst.msk [vmem:[#allocation2 + $0x38] sm:$0xff] %vm21_vm0, %v3000_v12  ;;  %v3001_v16 = vld [vmem:[%s3627_s0 + $0x38] sm:$0xff]  }
   0x7   :  { %2581 = vmatpush3.bf16.msra.mxu0 %v2989_v2  ;;  %v3002_v17 = vld [vmem:[%s3627_s0 + $0x40] sm:$0xff]   ;;  %164 = vst.msk [vmem:[#allocation2 + $0x40] sm:$0xff] %vm21_vm0, %v3001_v16  ;;  %v3003_v19 = vld [vmem:[%s3627_s0 + $0x48] sm:$0xff]   ;;  %v3004_v20 = vld [vmem:[%s3626_s1 + $0x10] sm:$0xff]  }
   0x8   :  { %2582 = vmatprep.subr.bf16.mxu0 %v2990_v3  ;;  %165 = vst.msk [vmem:[#allocation2 + $0x48] sm:$0xff] %vm21_vm0, %v3002_v17  ;;  %166 = vst.msk [vmem:[#allocation2 + $0x50] sm:$0xff] %vm21_vm0, %v3003_v19  ;;  %v3005_v21 = vld [vmem:[%s3627_s0 + $0x50] sm:$0xff]   ;;  %v3006_v22 = vld [vmem:[%s3627_s0 + $0x58] sm:$0xff]  }
   0x9   :  { %167 = vst.msk [vmem:[#allocation2 + $0x58] sm:$0xff] %vm21_vm0, %v3005_v21  ;;  %168 = vst.msk [vmem:[#allocation2 + $0x60] sm:$0xff] %vm21_vm0, %v3006_v22  ;;  %v3007_v23 = vld [vmem:[%s3627_s0 + $0x60] sm:$0xff]   ;;  %v3008_v25 = vld [vmem:[%s3627_s0 + $0x68] sm:$0xff]  }
   0xa   :  { %v3122_v13 = vld [vmem:[#allocation2 + $0x8] sm:$0xff]  ;;  %v3126_v14 = vld [vmem:[#allocation2 + $0x10] sm:$0xff]  ;;  %169 = vst.msk [vmem:[#allocation2 + $0x68] sm:$0xff] %vm21_vm0, %v3007_v23  ;;  %v3009_v27 = vld [vmem:[%s3626_s1 + $0x18] sm:$0xff]  }
   0xb   :  { %2583 = vmatpush3.bf16.msra.mxu0 %v2990_v3  ;;  %2586 = vmatprep.mubr.msk.bf16.mxu0 %vm21_vm0, %v3122_v13  ;;  %v3138_v18 = vld [vmem:[#allocation2 + $0x18] sm:$0xff]  ;;  %170 = vst.msk [vmem:[#allocation2 + $0x70] sm:$0xff] %vm21_vm0, %v3008_v25  ;;  %v3010_v28 = vld [vmem:[%s3627_s0 + $0x70] sm:$0xff]   ;;  %v3012_v30 = vld [vmem:[%s3626_s1 + $0x40] sm:$0xff]   ;;  %v3343_v3 = vsub.s32 0, %v988_v60 }
   0xc   :  { %2584 = vmatprep.subr.bf16.mxu0 %v2991_v6  ;;  %v3164_v24 = vld [vmem:[#allocation2 + $0x20] sm:$0xff]  ;;  %v3169_v26 = vld [vmem:[#allocation2 + $0x28] sm:$0xff]  ;;  %v3011_v29 = vld [vmem:[%s3627_s0 + $0x78] sm:$0xff]   ;;  %171 = vst.msk [vmem:[#allocation2 + $0x78] sm:$0xff] %vm21_vm0, %v3010_v28 }
   0xd   :  { %172 = vst.msk [vmem:[#allocation2 + $0x80] sm:$0xff] %vm21_vm0, %v3011_v29  ;;  %v3191_v31 = vld [vmem:[#allocation2 + $0x30] sm:$0xff]  ;;  %v3193_v32 = vld [vmem:[#allocation2 + $0x38] sm:$0xff]  ;;  %v173_v42 = vld [vmem:[#allocation2] sm:$0xff] }
   0xe   :  { %v3199_v33 = vld [vmem:[#allocation2 + $0x40] sm:$0xff]  ;;  %v3017_v44 = vld [vmem:[%s3628_s3 + $0x48] sm:$0xff]   ;;  %v3018_v46 = vld [vmem:[%s3628_s3 + $0x50] sm:$0xff]  }
   0xf   :  { %2585 = vmatpush3.bf16.msra.mxu0 %v2991_v6  ;;  %v3201_v34 = vld [vmem:[#allocation2 + $0x48] sm:$0xff]  ;;  %v3207_v35 = vld [vmem:[#allocation2 + $0x50] sm:$0xff]  ;;  %v3016_v43 = vld [vmem:[%s3628_s3 + $0x40] sm:$0xff]  }
  0x10   :  { %2618 = vmatprep.subr.bf16.mxu0 %v2994_v11  ;;  %v3209_v36 = vld [vmem:[#allocation2 + $0x58] sm:$0xff]  ;;  %v3215_v37 = vld [vmem:[#allocation2 + $0x60] sm:$0xff]  ;;  %2842 = vmatprep.subr.bf16.mxu1 %v3016_v43  ;;  %v3013_v45 = vld [vmem:[%s3626_s1 + $0x48] sm:$0xff]  }
  0x11   :  { %v3217_v38 = vld [vmem:[#allocation2 + $0x68] sm:$0xff]  ;;  %2850 = vmatpush3.bf16.msra.mxu1 %v3016_v43  ;;  %v3014_v47 = vld [vmem:[%s3626_s1 + $0x50] sm:$0xff]   ;;  %v3019_v48 = vld [vmem:[%s3628_s3 + $0x58] sm:$0xff]  }
  0x12   :  { %2587 = vmatmul.mubr.msk.bf16.vlgmr.msra.gmra.mrb[0].mxu0 %vm21_vm0, %v3126_v14  ;;  %v3223_v39 = vld [vmem:[#allocation2 + $0x70] sm:$0xff]  ;;  %2843 = vmatprep.subr.bf16.mxu1 %v3017_v44  ;;  %v3015_v49 = vld [vmem:[%s3626_s1 + $0x58] sm:$0xff]   ;;  %v3020_v50 = vld [vmem:[%s3628_s3 + $0x60] sm:$0xff]  }
  0x13   :  { %2619 = vmatpush3.bf16.msra.mxu0 %v2994_v11  ;;  %2590 = vmatprep.mubr.msk.bf16.mxu0 %vm21_vm0, %v3138_v18  ;;  %v3225_v40 = vld [vmem:[#allocation2 + $0x78] sm:$0xff]  ;;  %v3021_v51 = vld [vmem:[%s3628_s3 + $0x68] sm:$0xff]   ;;  %v3022_v53 = vld [vmem:[%s3628_s3 + $0x70] sm:$0xff]  }
  0x14   :  { %2620 = vmatprep.subr.bf16.mxu0 %v2999_v15  ;;  %v3231_v41 = vld [vmem:[#allocation2 + $0x80] sm:$0xff]  ;;  %v704_v52 = vld [vmem:[#allocation2 + $0x88] sm:$0xff]  ;;  %v3023_v54 = vld [vmem:[%s3628_s3 + $0x78] sm:$0xff]  }
  0x15   :  { %2851 = vmatpush3.bf16.msra.mxu1 %v3017_v44  ;;  %v3333_v55 = vld [vmem:[%s3628_s3] sm:$0xff]  }
  0x16   :  { %2844 = vmatprep.subr.bf16.mxu1 %v3018_v46  ;;  %v979_v62 = vld [vmem:[%s3629_s2] sm:$0xff] }
  0x17   :  { %2621 = vmatpush3.bf16.msra.mxu0 %v2999_v15  ;;  %v990_v63 = vrot.slane %v979_v62, %v3336_v61  ;;  %v983_v6 = vcombine.high %v979_v62, %v979_v62 }
  0x18   :  { %2622 = vmatprep.subr.bf16.mxu0 %v3004_v20 }
  0x19   :  { %2852 = vmatpush3.bf16.msra.mxu1 %v3018_v46  ;;  %v998_v0 = vcombine.high %v990_v63, %v990_v63  ;;  %v1006_v4 = vrot.slane %v990_v63, %v3336_v61  ;;  %v997_v12 = vrot.slane %v983_v6, %v3336_v61 }
  0x1a   :  { %2591 = vmatmul.mubr.msk.bf16.gmra.mrb[4].mxu0 %vm21_vm0, %v3164_v24  ;;  %2845 = vmatprep.subr.bf16.mxu1 %v3019_v48 }
  0x1b   :  { %2594 = vmatprep.mubr.msk.bf16.mxu0 %vm21_vm0, %v3169_v26  ;;  %2623 = vmatpush3.bf16.msra.mxu0 %v3004_v20  ;;  %v1020_v2 = vrot.slane %v998_v0, %v3336_v61  ;;  %v1084_v7 = vrot.slane %v1006_v4, %v3343_v3  ;;  %v1028_v15 = vcombine.high %v1006_v4, %v1006_v4 }
  0x1c   :  { %2624 = vmatprep.subr.bf16.mxu0 %v3009_v27  ;;  %v999_v22 = vcombine.high %v997_v12, %v997_v12 }
  0x1d   :  { %2853 = vmatpush3.bf16.msra.mxu1 %v3019_v48  ;;  %v1088_v5 = vrot.slane %v1020_v2, %v3343_v3  ;;  %v1030_v11 = vcombine.high %v1020_v2, %v1020_v2  ;;  %v1092_v25 = vrot.slane %v1028_v15, %v3343_v3  ;;  %v3027_v2 = vld [vmem:[%s3628_s3 + $0x10] sm:$0xff]  }
  0x1e   :  { %2846 = vmatprep.subr.bf16.mxu1 %v3020_v50 }
  0x1f   :  { %2625 = vmatpush3.bf16.msra.mxu0 %v3009_v27  ;;  %v1096_v21 = vrot.slane %v1030_v11, %v3343_v3 }
  0x20   :  { %2658 = vmatprep.subr.bf16.mxu0 %v3012_v30 }
  0x21   :  { %2854 = vmatpush3.bf16.msra.mxu1 %v3020_v50 }
  0x22   :  { %2595 = vmatmul.mubr.msk.bf16.gmra.mrb[8].mxu0 %vm21_vm0, %v3191_v31  ;;  %2847 = vmatprep.subr.bf16.mxu1 %v3021_v51 }
  0x23   :  { %2598 = vmatprep.mubr.msk.bf16.mxu0 %vm21_vm0, %v3193_v32 }
  0x25   :  { %2855 = vmatpush3.bf16.msra.mxu1 %v3021_v51 }
  0x26   :  { %2848 = vmatprep.subr.bf16.mxu1 %v3022_v53 }
  0x29   :  { %2856 = vmatpush3.bf16.msra.mxu1 %v3022_v53 }
  0x2a   :  { %2599 = vmatmul.mubr.msk.bf16.gmra.mrb[12].mxu0 %vm21_vm0, %v3199_v33  ;;  %2849 = vmatprep.subr.bf16.mxu1 %v3023_v54 }
  0x2b   :  { %2602 = vmatprep.mubr.msk.bf16.mxu0 %vm21_vm0, %v3201_v34 }
  0x2d   :  { %2857 = vmatpush3.bf16.msra.mxu1 %v3023_v54 }
  0x2e   :  { %2746 = vmatprep.subr.bf16.mxu1 %v3333_v55 }
  0x32   :  { %2603 = vmatmul.mubr.msk.bf16.gmra.mrb[16].mxu0 %vm21_vm0, %v3207_v35 }
  0x33   :  { %2606 = vmatprep.mubr.msk.bf16.mxu0 %vm21_vm0, %v3209_v36 }
  0x3a   :  { %2607 = vmatmul.mubr.msk.bf16.gmra.mrb[20].mxu0 %vm21_vm0, %v3215_v37 }
  0x3b   :  { %2610 = vmatprep.mubr.msk.bf16.mxu0 %vm21_vm0, %v3217_v38 }
  0x42   :  { %2611 = vmatmul.mubr.msk.bf16.gmra.mrb[24].mxu0 %vm21_vm0, %v3223_v39 }
  0x43   :  { %2614 = vmatprep.mubr.msk.bf16.mxu0 %vm21_vm0, %v3225_v40 }
  0x4a   :  { %2615 = vmatmul.mubr.msk.bf16.gmra.mrb[28].mxu0 %vm21_vm0, %v3231_v41 }
  0x4b   :  { %2626 = vmatprep.mubr.msk.bf16.mxu0 %vm21_vm0, %v173_v42 }
  0x52   :  { %2627 = vmatmul.mubr.msk.bf16.vlgmr.msra.gmra.mrb[0].mxu0 %vm21_vm0, %v3122_v13 }
  0x53   :  { %2659 = vmatpush3.bf16.msra.mxu0 %v3012_v30  ;;  %2630 = vmatprep.mubr.msk.bf16.mxu0 %vm21_vm0, %v3126_v14 }
  0x54   :  { %2660 = vmatprep.subr.bf16.mxu0 %v3013_v45 }
  0x57   :  { %2661 = vmatpush3.bf16.msra.mxu0 %v3013_v45 }
  0x58   :  { %2662 = vmatprep.subr.bf16.mxu0 %v3014_v47 }
  0x5a   :  { %2631 = vmatmul.mubr.msk.bf16.gmra.mrb[4].mxu0 %vm21_vm0, %v3138_v18 }
  0x5b   :  { %2634 = vmatprep.mubr.msk.bf16.mxu0 %vm21_vm0, %v3164_v24  ;;  %2663 = vmatpush3.bf16.msra.mxu0 %v3014_v47 }
  0x5c   :  { %2664 = vmatprep.subr.bf16.mxu0 %v3015_v49 }
  0x5f   :  { %2665 = vmatpush3.bf16.msra.mxu0 %v3015_v49 }
  0x60   :  { %2698 = vmatprep.subr.bf16.mxu0 %v3016_v43 }
  0x62   :  { %2635 = vmatmul.mubr.msk.bf16.gmra.mrb[8].mxu0 %vm21_vm0, %v3169_v26 }
  0x63   :  { %2638 = vmatprep.mubr.msk.bf16.mxu0 %vm21_vm0, %v3191_v31 }
  0x6a   :  { %2639 = vmatmul.mubr.msk.bf16.gmra.mrb[12].mxu0 %vm21_vm0, %v3193_v32 }
  0x6b   :  { %2642 = vmatprep.mubr.msk.bf16.mxu0 %vm21_vm0, %v3199_v33 }
  0x72   :  { %2643 = vmatmul.mubr.msk.bf16.gmra.mrb[16].mxu0 %vm21_vm0, %v3201_v34 }
  0x73   :  { %2646 = vmatprep.mubr.msk.bf16.mxu0 %vm21_vm0, %v3207_v35 }
  0x7a   :  { %2647 = vmatmul.mubr.msk.bf16.gmra.mrb[20].mxu0 %vm21_vm0, %v3209_v36 }
  0x7b   :  { %2650 = vmatprep.mubr.msk.bf16.mxu0 %vm21_vm0, %v3215_v37 }
  0x82   :  { %2651 = vmatmul.mubr.msk.bf16.gmra.mrb[24].mxu0 %vm21_vm0, %v3217_v38 }
  0x83   :  { %2654 = vmatprep.mubr.msk.bf16.mxu0 %vm21_vm0, %v3223_v39 }
  0x8a   :  { %2655 = vmatmul.mubr.msk.bf16.gmra.mrb[28].mxu0 %vm21_vm0, %v3225_v40 }
  0x8b   :  { %2666 = vmatprep.mubr.msk.bf16.mxu0 %vm21_vm0, %v3126_v14 }
  0x92   :  { %2667 = vmatmul.mubr.msk.bf16.vlgmr.msra.gmra.mrb[0].mxu0 %vm21_vm0, %v3138_v18 }
  0x93   :  { %2670 = vmatprep.mubr.msk.bf16.mxu0 %vm21_vm0, %v3164_v24  ;;  %2699 = vmatpush3.bf16.msra.mxu0 %v3016_v43 }
  0x94   :  { %2700 = vmatprep.subr.bf16.mxu0 %v3017_v44 }
  0x97   :  { %2701 = vmatpush3.bf16.msra.mxu0 %v3017_v44  ;;  %v3364_v44 = vld [vmem:[%s3629_s2 + $0x8] sm:$0xff] }
  0x98   :  { %2702 = vmatprep.subr.bf16.mxu0 %v3018_v46 }
  0x9a   :  { %2671 = vmatmul.mubr.msk.bf16.gmra.mrb[4].mxu0 %vm21_vm0, %v3169_v26 }
  0x9b   :  { %2674 = vmatprep.mubr.msk.bf16.mxu0 %vm21_vm0, %v3191_v31  ;;  %2703 = vmatpush3.bf16.msra.mxu0 %v3018_v46  ;;  %v1027_v31 = vrot.slane %v999_v22, %v3336_v61  ;;  %v3029_v22 = vld [vmem:[%s3628_s3 + $0x20] sm:$0xff]  }
  0x9c   :  { %2704 = vmatprep.subr.bf16.mxu0 %v3019_v48 }
  0x9f   :  { %2705 = vmatpush3.bf16.msra.mxu0 %v3019_v48 }
  0xa0   :  { %2706 = vmatprep.subr.bf16.mxu0 %v3020_v50 }
  0xa2   :  { %2675 = vmatmul.mubr.msk.bf16.gmra.mrb[8].mxu0 %vm21_vm0, %v3193_v32 }
  0xa3   :  { %2678 = vmatprep.mubr.msk.bf16.mxu0 %vm21_vm0, %v3199_v33  ;;  %2707 = vmatpush3.bf16.msra.mxu0 %v3020_v50  ;;  %v1031_v50 = vcombine.high %v1027_v31, %v1027_v31 }
  0xa4   :  { %2708 = vmatprep.subr.bf16.mxu0 %v3021_v51 }
  0xa5   :  { %v1112_v63 = vrot.slane %v1031_v50, %v3343_v3 }
  0xa7   :  { %2709 = vmatpush3.bf16.msra.mxu0 %v3021_v51  ;;  %v3026_v51 = vld [vmem:[%s3628_s3 + $0x8] sm:$0xff]  }
  0xa8   :  { %2710 = vmatprep.subr.bf16.mxu0 %v3022_v53 }
  0xaa   :  { %2679 = vmatmul.mubr.msk.bf16.gmra.mrb[12].mxu0 %vm21_vm0, %v3201_v34  ;;  %v1013_v34 = vrot.slane %v997_v12, %v3336_v61  ;;  %v3028_v12 = vld [vmem:[%s3628_s3 + $0x18] sm:$0xff]  }
  0xab   :  { %2682 = vmatprep.mubr.msk.bf16.mxu0 %vm21_vm0, %v3207_v35  ;;  %2711 = vmatpush3.bf16.msra.mxu0 %v3022_v53 }
  0xac   :  { %2712 = vmatprep.subr.bf16.mxu0 %v3023_v54  ;;  %v1100_v43 = vrot.slane %v1013_v34, %v3343_v3  ;;  %v1029_v56 = vcombine.high %v1013_v34, %v1013_v34 }
  0xae   :  { %v1108_v6 = vrot.slane %v1029_v56, %v3343_v3 }
  0xaf   :  { %2713 = vmatpush3.bf16.msra.mxu0 %v3023_v54 }
  0xb2   :  { %2683 = vmatmul.mubr.msk.bf16.gmra.mrb[16].mxu0 %vm21_vm0, %v3209_v36 }
  0xb3   :  { %2686 = vmatprep.mubr.msk.bf16.mxu0 %vm21_vm0, %v3215_v37 }
  0xba   :  { %2687 = vmatmul.mubr.msk.bf16.gmra.mrb[20].mxu0 %vm21_vm0, %v3217_v38 }
  0xbb   :  { %2690 = vmatprep.mubr.msk.bf16.mxu0 %vm21_vm0, %v3223_v39 }
  0xc2   :  { %2691 = vmatmul.mubr.msk.bf16.gmra.mrb[24].mxu0 %vm21_vm0, %v3225_v40  ;;  %v1104_v40 = vrot.slane %v1027_v31, %v3343_v3 }
  0xc3   :  { %2694 = vmatprep.mubr.msk.bf16.mxu0 %vm21_vm0, %v3231_v41 }
  0xca   :  { %2695 = vmatmul.mubr.msk.bf16.gmra.mrb[28].mxu0 %vm21_vm0, %v704_v52  ;;  %v1039_v52 = vrot.slane %v3364_v44, %v3336_v61 }
  0xcc   :  { %v1047_v0 = vcombine.high %v1039_v52, %v1039_v52  ;;  %v1055_v15 = vrot.slane %v1039_v52, %v3336_v61 }
  0xce   :  { %v1069_v11 = vrot.slane %v1047_v0, %v3336_v61 }
  0xd0   :  { %v1079_v34 = vcombine.high %v1069_v11, %v1069_v11 }
 0x165   :  { %v2668_v8 = vpop.f32.mrb[0].mxu0 }
 0x166   :  { %v1163_v9 = vadd.f32 %v2668_v8, %v1088_v5  ;;  %v820_v10 = vpop.f32.mrb[1].mxu0 }
 0x167   :  { %v1161_v13 = vadd.f32 %v1084_v7, %v820_v10  ;;  %v2669_v14 = vpop.f32.mrb[2].mxu0 }
 0x168   :  { %v1164_v16 = vadd.f32 %v2669_v14, %v1088_v5  ;;  %v823_v17 = vpop.f32.mrb[3].mxu0  ;;  %v1195_v19 = vmax.f32 %v1163_v9, 0.0 }
 0x169   :  { %v1162_v18 = vadd.f32 %v1084_v7, %v823_v17  ;;  %v1193_v23 = vmax.f32 %v1161_v13, 0.0 }
 0x16a   :  { %v1196_v20 = vmax.f32 %v1164_v16, 0.0 }
 0x16b   :  { %v1194_v24 = vmax.f32 %v1162_v18, 0.0 }
 0x16c   :  { %v3351_v26 = vpack.c.bf16 %v1196_v20, %v1195_v19 }
 0x16d   :  { %v3353_v27 = vpack.c.bf16 %v1194_v24, %v1193_v23  ;;  %v2672_v28 = vpop.f32.mrb[4].mxu0  ;;  %v1032_v23 = vcombine.high %v3364_v44, %v3364_v44 }
 0x16e   :  { %v1167_v29 = vadd.f32 %v2672_v28, %v1096_v21  ;;  %v836_v30 = vpop.f32.mrb[5].mxu0  ;;  %v1116_v28 = vrot.slane %v1055_v15, %v3343_v3 }
 0x16f   :  { %v1165_v32 = vadd.f32 %v1092_v25, %v836_v30  ;;  %v2673_v33 = vpop.f32.mrb[6].mxu0  ;;  %2714 = vmatprep.mubr.bf16.mxu0 %v3353_v27 }
 0x170   :  { %v1168_v35 = vadd.f32 %v2673_v33, %v1096_v21  ;;  %v839_v36 = vpop.f32.mrb[7].mxu0  ;;  %2715 = vmatmul.mubr.bf16.vlgmr.msra.gmra.mrb[32].mxu0 %v3351_v26  ;;  %v1199_v38 = vmax.f32 %v1167_v29, 0.0  ;;  %v1120_v21 = vrot.slane %v1069_v11, %v3343_v3 }
 0x171   :  { %v1166_v37 = vadd.f32 %v1092_v25, %v839_v36  ;;  %v1197_v41 = vmax.f32 %v1165_v32, 0.0  ;;  %v3031_v36 = vld [vmem:[%s3628_s3 + $0x28] sm:$0xff]  }
 0x172   :  { %v1200_v39 = vmax.f32 %v1168_v35, 0.0  ;;  %v1046_v35 = vrot.slane %v1032_v23, %v3336_v61 }
 0x173   :  { %v1198_v42 = vmax.f32 %v1166_v37, 0.0 }
 0x174   :  { %v3366_v45 = vpack.c.bf16 %v1200_v39, %v1199_v38  ;;  %v1077_v39 = vcombine.high %v1055_v15, %v1055_v15  ;;  %v1062_v0 = vrot.slane %v1046_v35, %v3336_v61 }
 0x175   :  { %v3368_v46 = vpack.c.bf16 %v1198_v42, %v1197_v41  ;;  %v2676_v47 = vpop.f32.mrb[8].mxu0 }
 0x176   :  { %v1171_v48 = vadd.f32 %v2676_v47, %v1104_v40  ;;  %v852_v49 = vpop.f32.mrb[9].mxu0  ;;  %v1128_v47 = vrot.slane %v1079_v34, %v3343_v3  ;;  %v1124_v52 = vrot.slane %v1077_v39, %v3343_v3 }
 0x177   :  { %v1169_v53 = vadd.f32 %v1100_v43, %v852_v49  ;;  %v2677_v54 = vpop.f32.mrb[10].mxu0  ;;  %2718 = vmatprep.mubr.bf16.mxu1 %v3368_v46  ;;  %v3032_v49 = vld [vmem:[%s3628_s3 + $0x30] sm:$0xff]  }
 0x178   :  { %v1172_v57 = vadd.f32 %v2677_v54, %v1104_v40  ;;  %v855_v58 = vpop.f32.mrb[11].mxu0  ;;  %2719 = vmatmul.mubr.bf16.vlgmr.msra.gmra.mrb[0].mxu1 %v3366_v45  ;;  %v1203_v60 = vmax.f32 %v1171_v48, 0.0  ;;  %v1048_v48 = vcombine.high %v1046_v35, %v1046_v35 }
 0x179   :  { %v1170_v59 = vadd.f32 %v1100_v43, %v855_v58  ;;  %2747 = vmatpush3.bf16.msra.mxu1 %v3333_v55  ;;  %v1201_v4 = vmax.f32 %v1169_v53, 0.0 }
 0x17a   :  { %v1204_v62 = vmax.f32 %v1172_v57, 0.0  ;;  %2748 = vmatprep.subr.bf16.mxu1 %v3026_v51 }
 0x17b   :  { %v1202_v5 = vmax.f32 %v1170_v59, 0.0  ;;  %v1076_v59 = vrot.slane %v1048_v48, %v3336_v61 }
 0x17c   :  { %v3383_v7 = vpack.c.bf16 %v1204_v62, %v1203_v60  ;;  %v3033_v60 = vld [vmem:[%s3628_s3 + $0x38] sm:$0xff]  }
 0x17d   :  { %v3385_v8 = vpack.c.bf16 %v1202_v5, %v1201_v4  ;;  %v2680_v9 = vpop.f32.mrb[12].mxu0  ;;  %2749 = vmatpush3.bf16.msra.mxu1 %v3026_v51 }
 0x17e   :  { %v1175_v55 = vadd.f32 %v2680_v9, %v1112_v63  ;;  %v868_v10 = vpop.f32.mrb[13].mxu0  ;;  %2750 = vmatprep.subr.bf16.mxu1 %v3027_v2 }
 0x17f   :  { %v1173_v13 = vadd.f32 %v1108_v6, %v868_v10  ;;  %v2681_v14 = vpop.f32.mrb[14].mxu0  ;;  %2722 = vmatprep.mubr.bf16.mxu1 %v3385_v8  ;;  %v3034_v10 = vld [vmem:[%s3628_s3 + $0x80] sm:$0xff]  }
 0x180   :  { %v1176_v16 = vadd.f32 %v2681_v14, %v1112_v63  ;;  %v871_v17 = vpop.f32.mrb[15].mxu0  ;;  %2723 = vmatmul.mubr.bf16.gmra.mrb[4].mxu1 %v3383_v7  ;;  %v1207_v19 = vmax.f32 %v1175_v55, 0.0  ;;  %v1136_v55 = vrot.slane %v1076_v59, %v3343_v3 }
 0x181   :  { %v1174_v18 = vadd.f32 %v1108_v6, %v871_v17  ;;  %2751 = vmatpush3.bf16.msra.mxu1 %v3027_v2  ;;  %v1205_v24 = vmax.f32 %v1173_v13, 0.0  ;;  %v1132_v13 = vrot.slane %v1062_v0, %v3343_v3 }
 0x182   :  { %v1208_v20 = vmax.f32 %v1176_v16, 0.0  ;;  %2752 = vmatprep.subr.bf16.mxu1 %v3028_v12 }
 0x183   :  { %v1206_v25 = vmax.f32 %v1174_v18, 0.0 }
 0x184   :  { %v3401_v29 = vpack.c.bf16 %v1208_v20, %v1207_v19  ;;  %v1080_v19 = vcombine.high %v1076_v59, %v1076_v59  ;;  %v3037_v59 = vld [vmem:[%s3628_s3 + $0x98] sm:$0xff]  }
 0x185   :  { %v3403_v30 = vpack.c.bf16 %v1206_v25, %v1205_v24  ;;  %v2684_v31 = vpop.f32.mrb[16].mxu0  ;;  %2753 = vmatpush3.bf16.msra.mxu1 %v3028_v12 }
 0x186   :  { %v1179_v32 = vadd.f32 %v2684_v31, %v1120_v21  ;;  %v884_v33 = vpop.f32.mrb[17].mxu0  ;;  %2754 = vmatprep.subr.bf16.mxu1 %v3029_v22 }
 0x187   :  { %v1177_v37 = vadd.f32 %v1116_v28, %v884_v33  ;;  %v2685_v38 = vpop.f32.mrb[18].mxu0  ;;  %2726 = vmatprep.mubr.bf16.mxu1 %v3403_v30 }
 0x188   :  { %v1180_v40 = vadd.f32 %v2685_v38, %v1120_v21  ;;  %v887_v41 = vpop.f32.mrb[19].mxu0  ;;  %2727 = vmatmul.mubr.bf16.gmra.mrb[8].mxu1 %v3401_v29  ;;  %v1211_v43 = vmax.f32 %v1179_v32, 0.0  ;;  %v1144_v32 = vrot.slane %v1080_v19, %v3343_v3 }
 0x189   :  { %v1178_v42 = vadd.f32 %v1116_v28, %v887_v41  ;;  %2755 = vmatpush3.bf16.msra.mxu1 %v3029_v22  ;;  %v1209_v50 = vmax.f32 %v1177_v37, 0.0  ;;  %v1078_v22 = vcombine.high %v1062_v0, %v1062_v0 }
 0x18a   :  { %v1212_v44 = vmax.f32 %v1180_v40, 0.0  ;;  %2756 = vmatprep.subr.bf16.mxu1 %v3031_v36 }
 0x18b   :  { %v1210_v51 = vmax.f32 %v1178_v42, 0.0  ;;  %v1140_v35 = vrot.slane %v1078_v22, %v3343_v3 }
 0x18c   :  { %v3416_v53 = vpack.c.bf16 %v1212_v44, %v1211_v43 }
 0x18d   :  { %v3418_v54 = vpack.c.bf16 %v1210_v51, %v1209_v50  ;;  %v2688_v56 = vpop.f32.mrb[20].mxu0  ;;  %2757 = vmatpush3.bf16.msra.mxu1 %v3031_v36 }
 0x18e   :  { %v1183_v57 = vadd.f32 %v2688_v56, %v1128_v47  ;;  %v900_v58 = vpop.f32.mrb[21].mxu0  ;;  %2758 = vmatprep.subr.bf16.mxu1 %v3032_v49 }
 0x18f   :  { %v1181_v62 = vadd.f32 %v1124_v52, %v900_v58  ;;  %v2689_v63 = vpop.f32.mrb[22].mxu0  ;;  %2730 = vmatprep.mubr.bf16.mxu1 %v3418_v54  ;;  %v3036_v58 = vld [vmem:[%s3628_s3 + $0x90] sm:$0xff]  }
 0x190   :  { %v1184_v2 = vadd.f32 %v2689_v63, %v1128_v47  ;;  %v903_v4 = vpop.f32.mrb[23].mxu0  ;;  %2731 = vmatmul.mubr.bf16.gmra.mrb[12].mxu1 %v3416_v53  ;;  %v1215_v6 = vmax.f32 %v1183_v57, 0.0  ;;  %v3035_v57 = vld [vmem:[%s3628_s3 + $0x88] sm:$0xff]   ;;  %v3041_v63 = vld [vmem:[%s3628_s3 + $0xb8] sm:$0xff]  }
 0x191   :  { %v1182_v5 = vadd.f32 %v1124_v52, %v903_v4  ;;  %2759 = vmatpush3.bf16.msra.mxu1 %v3032_v49  ;;  %v1213_v11 = vmax.f32 %v1181_v62, 0.0  ;;  %v3040_v62 = vld [vmem:[%s3628_s3 + $0xb0] sm:$0xff]  }
 0x192   :  { %v1216_v9 = vmax.f32 %v1184_v2, 0.0  ;;  %2760 = vmatprep.subr.bf16.mxu1 %v3033_v60 }
 0x193   :  { %v1214_v12 = vmax.f32 %v1182_v5, 0.0 }
 0x194   :  { %v3432_v14 = vpack.c.bf16 %v1216_v9, %v1215_v6 }
 0x195   :  { %v3434_v15 = vpack.c.bf16 %v1214_v12, %v1213_v11  ;;  %v2692_v16 = vpop.f32.mrb[24].mxu0  ;;  %2761 = vmatpush3.bf16.msra.mxu1 %v3033_v60  ;;  %v3039_v60 = vld [vmem:[%s3628_s3 + $0xa8] sm:$0xff]  }
 0x196   :  { %v1187_v17 = vadd.f32 %v2692_v16, %v1136_v55  ;;  %v916_v18 = vpop.f32.mrb[25].mxu0  ;;  %2794 = vmatprep.subr.bf16.mxu1 %v3034_v10 }
 0x197   :  { %v1185_v20 = vadd.f32 %v1132_v13, %v916_v18  ;;  %v2693_v21 = vpop.f32.mrb[26].mxu0  ;;  %2734 = vmatprep.mubr.bf16.mxu1 %v3434_v15 }
 0x198   :  { %v1188_v23 = vadd.f32 %v2693_v21, %v1136_v55  ;;  %v919_v24 = vpop.f32.mrb[27].mxu0  ;;  %2735 = vmatmul.mubr.bf16.gmra.mrb[16].mxu1 %v3432_v14  ;;  %v1219_v28 = vmax.f32 %v1187_v17, 0.0 }
 0x199   :  { %v1186_v25 = vadd.f32 %v1132_v13, %v919_v24  ;;  %v1217_v33 = vmax.f32 %v1185_v20, 0.0 }
 0x19a   :  { %v1220_v31 = vmax.f32 %v1188_v23, 0.0 }
 0x19b   :  { %v1218_v34 = vmax.f32 %v1186_v25, 0.0 }
 0x19c   :  { %v3440_v36 = vpack.c.bf16 %v1220_v31, %v1219_v28 }
 0x19d   :  { %v3442_v37 = vpack.c.bf16 %v1218_v34, %v1217_v33  ;;  %v2696_v38 = vpop.f32.mrb[28].mxu0 }
 0x19e   :  { %v1191_v39 = vadd.f32 %v2696_v38, %v1144_v32  ;;  %v932_v40 = vpop.f32.mrb[29].mxu0 }
 0x19f   :  { %v1189_v41 = vadd.f32 %v1140_v35, %v932_v40  ;;  %v2697_v42 = vpop.f32.mrb[30].mxu0  ;;  %2738 = vmatprep.mubr.bf16.mxu1 %v3442_v37 }
 0x1a0   :  { %v1192_v43 = vadd.f32 %v2697_v42, %v1144_v32  ;;  %v935_v44 = vpop.f32.mrb[31].mxu0  ;;  %2739 = vmatmul.mubr.bf16.gmra.mrb[20].mxu1 %v3440_v36  ;;  %v1223_v48 = vmax.f32 %v1191_v39, 0.0 }
 0x1a1   :  { %v1190_v47 = vadd.f32 %v1140_v35, %v935_v44  ;;  %v1221_v50 = vmax.f32 %v1189_v41, 0.0 }
 0x1a2   :  { %v1224_v49 = vmax.f32 %v1192_v43, 0.0 }
 0x1a3   :  { %v1222_v51 = vmax.f32 %v1190_v47, 0.0 }
 0x1a4   :  { %v1240_v52 = vpack.c.bf16 %v1224_v49, %v1223_v48  ;;  %v2017_v49 = vld [vmem:[%s3630_s4 + $0x8] sm:$0xff] }
 0x1a5   :  { %v1239_v56 = vpack.c.bf16 %v1222_v51, %v1221_v50 }
 0x1a7   :  { %2742 = vmatprep.mubr.bf16.mxu1 %v1239_v56 }
 0x1a8   :  { %2743 = vmatmul.mubr.bf16.gmra.mrb[24].mxu1 %v1240_v52 }
 0x1a9   :  { %2762 = vmatprep.mubr.bf16.mxu1 %v3044_v1 }
 0x1b0   :  { %2763 = vmatmul.mubr.bf16.vlgmr.msra.gmra.mrb[28].mxu1 %v3353_v27  ;;  %v3038_v27 = vld [vmem:[%s3628_s3 + $0xa0] sm:$0xff]  }
 0x1b1   :  { %2766 = vmatprep.mubr.bf16.mxu1 %v3351_v26  ;;  %2795 = vmatpush3.bf16.msra.mxu1 %v3034_v10 }
 0x1b2   :  { %2796 = vmatprep.subr.bf16.mxu1 %v3035_v57 }
 0x1b5   :  { %2797 = vmatpush3.bf16.msra.mxu1 %v3035_v57  ;;  %v2076_v57 = vrot.slane %v2017_v49, %v3336_v61 }
 0x1b6   :  { %2798 = vmatprep.subr.bf16.mxu1 %v3036_v58 }
 0x1b8   :  { %2767 = vmatmul.mubr.bf16.gmra.mrb[0].mxu1 %v3368_v46 }
 0x1b9   :  { %2770 = vmatprep.mubr.bf16.mxu1 %v3366_v45  ;;  %2799 = vmatpush3.bf16.msra.mxu1 %v3036_v58 }
 0x1ba   :  { %2800 = vmatprep.subr.bf16.mxu1 %v3037_v59 }
 0x1bd   :  { %2801 = vmatpush3.bf16.msra.mxu1 %v3037_v59 }
 0x1be   :  { %2802 = vmatprep.subr.bf16.mxu1 %v3038_v27 }
 0x1c0   :  { %2771 = vmatmul.mubr.bf16.gmra.mrb[4].mxu1 %v3385_v8 }
 0x1c1   :  { %2774 = vmatprep.mubr.bf16.mxu1 %v3383_v7  ;;  %2803 = vmatpush3.bf16.msra.mxu1 %v3038_v27 }
 0x1c2   :  { %2804 = vmatprep.subr.bf16.mxu1 %v3039_v60 }
 0x1c5   :  { %2805 = vmatpush3.bf16.msra.mxu1 %v3039_v60 }
 0x1c6   :  { %2806 = vmatprep.subr.bf16.mxu1 %v3040_v62 }
 0x1c8   :  { %2775 = vmatmul.mubr.bf16.gmra.mrb[8].mxu1 %v3403_v30 }
 0x1c9   :  { %2778 = vmatprep.mubr.bf16.mxu1 %v3401_v29  ;;  %2807 = vmatpush3.bf16.msra.mxu1 %v3040_v62 }
 0x1ca   :  { %2808 = vmatprep.subr.bf16.mxu1 %v3041_v63 }
 0x1cd   :  { %2809 = vmatpush3.bf16.msra.mxu1 %v3041_v63 }
 0x1d0   :  { %2779 = vmatmul.mubr.bf16.gmra.mrb[12].mxu1 %v3418_v54 }
 0x1d1   :  { %2782 = vmatprep.mubr.bf16.mxu1 %v3416_v53 }
 0x1d8   :  { %2783 = vmatmul.mubr.bf16.gmra.mrb[16].mxu1 %v3434_v15 }
 0x1d9   :  { %2786 = vmatprep.mubr.bf16.mxu1 %v3432_v14 }
 0x1e0   :  { %2787 = vmatmul.mubr.bf16.gmra.mrb[20].mxu1 %v3442_v37 }
 0x1e1   :  { %2790 = vmatprep.mubr.bf16.mxu1 %v3440_v36 }
 0x1e8   :  { %2791 = vmatmul.mubr.bf16.gmra.mrb[24].mxu1 %v1239_v56 }
 0x1e9   :  { %2810 = vmatprep.mubr.bf16.mxu1 %v3351_v26 }
 0x1f0   :  { %2811 = vmatmul.mubr.bf16.vlgmr.msra.gmra.mrb[28].mxu1 %v3368_v46 }
 0x1f1   :  { %2814 = vmatprep.mubr.bf16.mxu1 %v3366_v45 }
 0x1f8   :  { %2815 = vmatmul.mubr.bf16.gmra.mrb[0].mxu1 %v3385_v8  ;;  %v2016_v8 = vld [vmem:[%s3630_s4] sm:$0xff] }
 0x1f9   :  { %2818 = vmatprep.mubr.bf16.mxu1 %v3383_v7  ;;  %v2020_v0 = vcombine.high %v2016_v8, %v2016_v8 }
 0x1fb   :  { %v2034_v55 = vrot.slane %v2020_v0, %v3336_v61 }
 0x1fd   :  { %v2036_v21 = vcombine.high %v2034_v55, %v2034_v55 }
 0x1ff   :  { %v2064_v34 = vrot.slane %v2036_v21, %v3336_v61 }
 0x200   :  { %2819 = vmatmul.mubr.bf16.gmra.mrb[4].mxu1 %v3403_v30 }
 0x201   :  { %2822 = vmatprep.mubr.bf16.mxu1 %v3401_v29  ;;  %v2027_v29 = vrot.slane %v2016_v8, %v3336_v61  ;;  %v2141_v44 = vrot.slane %v2064_v34, %v3343_v3  ;;  %v2084_v8 = vcombine.high %v2076_v57, %v2076_v57 }
 0x203   :  { %v2035_v30 = vcombine.high %v2027_v29, %v2027_v29 }
 0x208   :  { %2823 = vmatmul.mubr.bf16.gmra.mrb[8].mxu1 %v3418_v54  ;;  %v2043_v54 = vrot.slane %v2027_v29, %v3336_v61 }
 0x209   :  { %2826 = vmatprep.mubr.bf16.mxu1 %v3416_v53  ;;  %v2057_v53 = vrot.slane %v2035_v30, %v3336_v61 }
 0x20a   :  { %v2065_v12 = vcombine.high %v2043_v54, %v2043_v54 }
 0x20b   :  { %v2125_v2 = vrot.slane %v2057_v53, %v3343_v3  ;;  %v2067_v9 = vcombine.high %v2057_v53, %v2057_v53 }
 0x20c   :  { %v2129_v24 = vrot.slane %v2065_v12, %v3343_v3 }
 0x20d   :  { %v2133_v20 = vrot.slane %v2067_v9, %v3343_v3 }
 0x210   :  { %2827 = vmatmul.mubr.bf16.gmra.mrb[12].mxu1 %v3434_v15 }
 0x211   :  { %2830 = vmatprep.mubr.bf16.mxu1 %v3432_v14 }
 0x218   :  { %2831 = vmatmul.mubr.bf16.gmra.mrb[16].mxu1 %v3442_v37  ;;  %v2050_v37 = vrot.slane %v2034_v55, %v3336_v61 }
 0x219   :  { %2834 = vmatprep.mubr.bf16.mxu1 %v3440_v36 }
 0x21a   :  { %v2137_v48 = vrot.slane %v2050_v37, %v3343_v3  ;;  %v2066_v27 = vcombine.high %v2050_v37, %v2050_v37 }
 0x21c   :  { %v2145_v30 = vrot.slane %v2066_v27, %v3343_v3 }
 0x220   :  { %2835 = vmatmul.mubr.bf16.gmra.mrb[20].mxu1 %v1239_v56  ;;  %v2068_v56 = vcombine.high %v2064_v34, %v2064_v34 }
 0x221   :  { %2838 = vmatprep.mubr.bf16.mxu1 %v1240_v52 }
 0x228   :  { %2839 = vmatmul.mubr.bf16.gmra.mrb[24].mxu1 %v3044_v1  ;;  %v2121_v1 = vrot.slane %v2043_v54, %v3343_v3 }
 0x243   :  { %v2716_v26 = vpop.f32.mrb[32].mxu0 }
 0x244   :  { %v1405_v45 = vpop.f32.mrb[33].mxu0 }
 0x245   :  { %v2717_v46 = vpop.f32.mrb[34].mxu0 }
 0x246   :  { %v1408_v7 = vpop.f32.mrb[35].mxu0 }
 0x2c3   :  { %v2812_v4 = vpop.f32.mrb[28].mxu1 }
 0x2c4   :  { %v2858_v5 = vadd.f32 %v2812_v4, %v2716_v26  ;;  %v1857_v6 = vpop.f32.mrb[29].mxu1 }
 0x2c5   :  { %v2859_v10 = vadd.f32 %v1857_v6, %v1405_v45  ;;  %v2813_v11 = vpop.f32.mrb[30].mxu1 }
 0x2c6   :  { %v2200_v13 = vadd.f32 %v2858_v5, %v2125_v2  ;;  %v2860_v14 = vadd.f32 %v2813_v11, %v2717_v46  ;;  %v1860_v15 = vpop.f32.mrb[31].mxu1  ;;  %v2092_v5 = vrot.slane %v2076_v57, %v3336_v61 }
 0x2c7   :  { %v2198_v16 = vadd.f32 %v2859_v10, %v2121_v1  ;;  %v2861_v17 = vadd.f32 %v1860_v15, %v1408_v7  ;;  %v2149_v7 = vrot.slane %v2068_v56, %v3343_v3 }
 0x2c8   :  { %v2232_v18 = vmax.f32 %v2200_v13, 0.0  ;;  %v2201_v19 = vadd.f32 %v2860_v14, %v2125_v2  ;;  %v2106_v2 = vrot.slane %v2084_v8, %v3336_v61  ;;  %v2069_v14 = vcombine.high %v2017_v49, %v2017_v49 }
 0x2c9   :  { %v2230_v22 = vmax.f32 %v2198_v16, 0.0  ;;  %v2199_v23 = vadd.f32 %v2861_v17, %v2121_v1  ;;  %v2153_v16 = vrot.slane %v2092_v5, %v3343_v3 }
 0x2ca   :  { %2264 = vst [vmem:[%s3631_s5 + $0x10] sm:$0xff] %v2232_v18  ;;  %v2233_v25 = vmax.f32 %v2201_v19, 0.0  ;;  %v2157_v13 = vrot.slane %v2106_v2, %v3343_v3  ;;  %v2083_v21 = vrot.slane %v2069_v14, %v3336_v61 }
 0x2cb   :  { %2262 = vst [vmem:[%s3631_s5] sm:$0xff] %v2230_v22  ;;  %v2231_v28 = vmax.f32 %v2199_v23, 0.0  ;;  %v2816_v31 = vpop.f32.mrb[0].mxu1 }
 0x2cc   :  { %2265 = vst [vmem:[%s3631_s5 + $0x18] sm:$0xff] %v2233_v25  ;;  %v2204_v32 = vadd.f32 %v2816_v31, %v2133_v20  ;;  %v1873_v33 = vpop.f32.mrb[1].mxu1 }
 0x2cd   :  { %2263 = vst [vmem:[%s3631_s5 + $0x8] sm:$0xff] %v2231_v28  ;;  %v2202_v35 = vadd.f32 %v2129_v24, %v1873_v33  ;;  %v2817_v36 = vpop.f32.mrb[2].mxu1 }
 0x2ce   :  { %v2236_v38 = vmax.f32 %v2204_v32, 0.0  ;;  %v2205_v39 = vadd.f32 %v2817_v36, %v2133_v20  ;;  %v1876_v40 = vpop.f32.mrb[3].mxu1  ;;  %v2116_v20 = vcombine.high %v2106_v2, %v2106_v2  ;;  %v2085_v36 = vcombine.high %v2083_v21, %v2083_v21 }
 0x2cf   :  { %v2234_v41 = vmax.f32 %v2202_v35, 0.0  ;;  %v2203_v42 = vadd.f32 %v2129_v24, %v1876_v40  ;;  %v2114_v24 = vcombine.high %v2092_v5, %v2092_v5 }
 0x2d0   :  { %2268 = vst [vmem:[%s3631_s5 + $0x30] sm:$0xff] %v2236_v38  ;;  %v2237_v43 = vmax.f32 %v2205_v39, 0.0  ;;  %v2165_v35 = vrot.slane %v2116_v20, %v3343_v3 }
 0x2d1   :  { %2266 = vst [vmem:[%s3631_s5 + $0x20] sm:$0xff] %v2234_v41  ;;  %v2235_v47 = vmax.f32 %v2203_v42, 0.0  ;;  %v2161_v38 = vrot.slane %v2114_v24, %v3343_v3  ;;  %v2113_v42 = vrot.slane %v2085_v36, %v3336_v61 }
 0x2d2   :  { %2269 = vst [vmem:[%s3631_s5 + $0x38] sm:$0xff] %v2237_v43 }
 0x2d3   :  { %2267 = vst [vmem:[%s3631_s5 + $0x28] sm:$0xff] %v2235_v47  ;;  %v2820_v50 = vpop.f32.mrb[4].mxu1  ;;  %v2099_v47 = vrot.slane %v2083_v21, %v3336_v61  ;;  %v2173_v57 = vrot.slane %v2113_v42, %v3343_v3 }
 0x2d4   :  { %v2208_v51 = vadd.f32 %v2820_v50, %v2141_v44  ;;  %v1889_v52 = vpop.f32.mrb[5].mxu1 }
 0x2d5   :  { %v2206_v58 = vadd.f32 %v2137_v48, %v1889_v52  ;;  %v2821_v59 = vpop.f32.mrb[6].mxu1 }
 0x2d6   :  { %v2240_v60 = vmax.f32 %v2208_v51, 0.0  ;;  %v2209_v62 = vadd.f32 %v2821_v59, %v2141_v44  ;;  %v1892_v63 = vpop.f32.mrb[7].mxu1  ;;  %v2169_v59 = vrot.slane %v2099_v47, %v3343_v3 }
 0x2d7   :  { %v2238_v26 = vmax.f32 %v2206_v58, 0.0  ;;  %v2207_v45 = vadd.f32 %v2137_v48, %v1892_v63 }
 0x2d8   :  { %2272 = vst [vmem:[%s3631_s5 + $0x50] sm:$0xff] %v2240_v60  ;;  %v2241_v46 = vmax.f32 %v2209_v62, 0.0  ;;  %v2117_v62 = vcombine.high %v2113_v42, %v2113_v42 }
 0x2d9   :  { %2270 = vst [vmem:[%s3631_s5 + $0x40] sm:$0xff] %v2238_v26  ;;  %v2239_v29 = vmax.f32 %v2207_v45, 0.0  ;;  %v2115_v45 = vcombine.high %v2099_v47, %v2099_v47 }
 0x2da   :  { %2273 = vst [vmem:[%s3631_s5 + $0x58] sm:$0xff] %v2241_v46 }
 0x2db   :  { %2271 = vst [vmem:[%s3631_s5 + $0x48] sm:$0xff] %v2239_v29  ;;  %v2824_v53 = vpop.f32.mrb[8].mxu1  ;;  %v2177_v2 = vrot.slane %v2115_v45, %v3343_v3 }
 0x2dc   :  { %v2212_v54 = vadd.f32 %v2824_v53, %v2149_v7  ;;  %v1905_v0 = vpop.f32.mrb[9].mxu1 }
 0x2dd   :  { %v2210_v4 = vadd.f32 %v2145_v30, %v1905_v0  ;;  %v2825_v1 = vpop.f32.mrb[10].mxu1 }
 0x2de   :  { %v2244_v6 = vmax.f32 %v2212_v54, 0.0  ;;  %v2213_v9 = vadd.f32 %v2825_v1, %v2149_v7  ;;  %v1908_v55 = vpop.f32.mrb[11].mxu1  ;;  %v2181_v54 = vrot.slane %v2117_v62, %v3343_v3 }
 0x2df   :  { %v2242_v10 = vmax.f32 %v2210_v4, 0.0  ;;  %v2211_v11 = vadd.f32 %v2145_v30, %v1908_v55 }
 0x2e0   :  { %2276 = vst [vmem:[%s3631_s5 + $0x70] sm:$0xff] %v2244_v6  ;;  %v2245_v12 = vmax.f32 %v2213_v9, 0.0 }
 0x2e1   :  { %2274 = vst [vmem:[%s3631_s5 + $0x60] sm:$0xff] %v2242_v10  ;;  %v2243_v15 = vmax.f32 %v2211_v11, 0.0 }
 0x2e2   :  { %2277 = vst [vmem:[%s3631_s5 + $0x78] sm:$0xff] %v2245_v12 }
 0x2e3   :  { %2275 = vst [vmem:[%s3631_s5 + $0x68] sm:$0xff] %v2243_v15  ;;  %v2828_v17 = vpop.f32.mrb[12].mxu1 }
 0x2e4   :  { %v2216_v18 = vadd.f32 %v2828_v17, %v2157_v13  ;;  %v1921_v19 = vpop.f32.mrb[13].mxu1 }
 0x2e5   :  { %v2214_v22 = vadd.f32 %v2153_v16, %v1921_v19  ;;  %v2829_v23 = vpop.f32.mrb[14].mxu1 }
 0x2e6   :  { %v2248_v25 = vmax.f32 %v2216_v18, 0.0  ;;  %v2217_v28 = vadd.f32 %v2829_v23, %v2157_v13  ;;  %v1924_v31 = vpop.f32.mrb[15].mxu1 }
 0x2e7   :  { %v2246_v32 = vmax.f32 %v2214_v22, 0.0  ;;  %v2215_v33 = vadd.f32 %v2153_v16, %v1924_v31 }
 0x2e8   :  { %2280 = vst [vmem:[%s3631_s5 + $0x90] sm:$0xff] %v2248_v25  ;;  %v2249_v34 = vmax.f32 %v2217_v28, 0.0 }
 0x2e9   :  { %2278 = vst [vmem:[%s3631_s5 + $0x80] sm:$0xff] %v2246_v32  ;;  %v2247_v37 = vmax.f32 %v2215_v33, 0.0 }
 0x2ea   :  { %2281 = vst [vmem:[%s3631_s5 + $0x98] sm:$0xff] %v2249_v34 }
 0x2eb   :  { %2279 = vst [vmem:[%s3631_s5 + $0x88] sm:$0xff] %v2247_v37  ;;  %v2832_v39 = vpop.f32.mrb[16].mxu1 }
 0x2ec   :  { %v2220_v40 = vadd.f32 %v2832_v39, %v2165_v35  ;;  %v1937_v41 = vpop.f32.mrb[17].mxu1 }
 0x2ed   :  { %v2218_v43 = vadd.f32 %v2161_v38, %v1937_v41  ;;  %v2833_v44 = vpop.f32.mrb[18].mxu1 }
 0x2ee   :  { %v2252_v48 = vmax.f32 %v2220_v40, 0.0  ;;  %v2221_v49 = vadd.f32 %v2833_v44, %v2165_v35  ;;  %v1940_v50 = vpop.f32.mrb[19].mxu1 }
 0x2ef   :  { %v2250_v51 = vmax.f32 %v2218_v43, 0.0  ;;  %v2219_v52 = vadd.f32 %v2161_v38, %v1940_v50 }
 0x2f0   :  { %2284 = vst [vmem:[%s3631_s5 + $0xb0] sm:$0xff] %v2252_v48  ;;  %v2253_v56 = vmax.f32 %v2221_v49, 0.0 }
 0x2f1   :  { %2282 = vst [vmem:[%s3631_s5 + $0xa0] sm:$0xff] %v2250_v51  ;;  %v2251_v58 = vmax.f32 %v2219_v52, 0.0 }
 0x2f2   :  { %2285 = vst [vmem:[%s3631_s5 + $0xb8] sm:$0xff] %v2253_v56 }
 0x2f3   :  { %2283 = vst [vmem:[%s3631_s5 + $0xa8] sm:$0xff] %v2251_v58  ;;  %v2836_v61 = vpop.f32.mrb[20].mxu1 }
 0x2f4   :  { %v2224_v27 = vadd.f32 %v2836_v61, %v2173_v57  ;;  %v1953_v60 = vpop.f32.mrb[21].mxu1 }
 0x2f5   :  { %v2222_v63 = vadd.f32 %v2169_v59, %v1953_v60  ;;  %v2837_v26 = vpop.f32.mrb[22].mxu1 }
 0x2f6   :  { %v2256_v46 = vmax.f32 %v2224_v27, 0.0  ;;  %v2225_v7 = vadd.f32 %v2837_v26, %v2173_v57  ;;  %v1956_v8 = vpop.f32.mrb[23].mxu1 }
 0x2f7   :  { %v2254_v29 = vmax.f32 %v2222_v63, 0.0  ;;  %v2223_v30 = vadd.f32 %v2169_v59, %v1956_v8 }
 0x2f8   :  { %2288 = vst [vmem:[%s3631_s5 + $0xd0] sm:$0xff] %v2256_v46  ;;  %v2257_v53 = vmax.f32 %v2225_v7, 0.0 }
 0x2f9   :  { %2286 = vst [vmem:[%s3631_s5 + $0xc0] sm:$0xff] %v2254_v29  ;;  %v2255_v0 = vmax.f32 %v2223_v30, 0.0 }
 0x2fa   :  { %2289 = vst [vmem:[%s3631_s5 + $0xd8] sm:$0xff] %v2257_v53 }
 0x2fb   :  { %2287 = vst [vmem:[%s3631_s5 + $0xc8] sm:$0xff] %v2255_v0  ;;  %v2840_v4 = vpop.f32.mrb[24].mxu1 }
 0x2fc   :  { %v2228_v1 = vadd.f32 %v2840_v4, %v2181_v54  ;;  %v1969_v5 = vpop.f32.mrb[25].mxu1 }
 0x2fd   :  { %v2226_v6 = vadd.f32 %v2177_v2, %v1969_v5  ;;  %v2841_v9 = vpop.f32.mrb[26].mxu1 }
 0x2fe   :  { %v2260_v55 = vmax.f32 %v2228_v1, 0.0  ;;  %v2229_v10 = vadd.f32 %v2841_v9, %v2181_v54  ;;  %v1972_v11 = vpop.f32.mrb[27].mxu1 }
 0x2ff   :  { %v2258_v12 = vmax.f32 %v2226_v6, 0.0  ;;  %v2227_v13 = vadd.f32 %v2177_v2, %v1972_v11 }
 0x300   :  { %2292 = vst [vmem:[%s3631_s5 + $0xf0] sm:$0xff] %v2260_v55  ;;  %v2261_v3 = vmax.f32 %v2229_v10, 0.0 }
 0x301   :  { %2290 = vst [vmem:[%s3631_s5 + $0xe0] sm:$0xff] %v2258_v12  ;;  %v2259_v14 = vmax.f32 %v2227_v13, 0.0 }
 0x302   :  { %2293 = vst [vmem:[%s3631_s5 + $0xf8] sm:$0xff] %v2261_v3 }
 0x303   :  { %2291 = vst [vmem:[%s3631_s5 + $0xe8] sm:$0xff] %v2259_v14 }

</bundles_post_ra>
